<compile_context>
chip_gen: v6e
topology: v6e:2x2x1
jax: 0.10.0
libtpu: 0.0.40
codegen_flags: <defaults>
</compile_context>

<pallas_src>
import jax
import jax.numpy as jnp
from jax.experimental import pallas as pl
from jax.experimental.pallas import tpu as pltpu

_LANE = 512                   # lane-dense row width (multiple of 128)
_MAX_BLOCK_BYTES = 2 << 20    # ~2 MiB per input block per pipeline buffer
_NUM_CORES = 2                # v7x has 2 TensorCores; costs ~nothing on v5e/v6e
_VMEM_LIMIT = 32 * 1024 * 1024


def _cdiv(a, b):
    return -(-a // b)


def _round_up(x, m):
    return _cdiv(x, m) * m


def _sublane(dtype):
    """Minimum sublane (second-minor) granularity for a dtype."""
    return max(8, 32 // jnp.dtype(dtype).itemsize)


def _plan_blocks(rows, sub, max_block_rows, num_cores):
    """Choose (num_cores, steps_per_core, block_rows).

    Guarantees every grid block overlaps at least one valid row, so at most the
    last block is partial (masked in-kernel) and the inputs never need padding.
    """
    base = max(1, _cdiv(rows, max_block_rows))
    nc = max(1, num_cores)
    if nc > 1:
        steps = _cdiv(base, nc)
        total = nc * steps
        block_rows = _round_up(_cdiv(rows, total), sub)
        if (total - 1) * block_rows < rows:        # every block has >= 1 valid row
            return nc, steps, block_rows
    steps = base
    block_rows = rows if steps == 1 else _round_up(_cdiv(rows, steps), sub)
    return 1, steps, block_rows


def _make_sse_kernel(n_pred, block_rows, steps, valid_rows, needs_mask):
    """SSE(pred_k, target) for k < n_pred, sharing a single read of target."""

    def kernel(*refs):
        pred_refs = refs[:n_pred]
        tgt_ref = refs[n_pred]
        out_ref = refs[n_pred + 1]
        acc_refs = refs[n_pred + 2:]

        i = pl.program_id(1)            # row-chunk index within this core's shard

        @pl.when(i == 0)
        def _init():
            for acc in acc_refs:
                acc[...] = jnp.zeros_like(acc)

        tgt = tgt_ref[...].astype(jnp.float32)

        if needs_mask:                  # static: only when blocks over-cover `rows`
            c = pl.program_id(0)
            row0 = (c * steps + i) * block_rows
            rid = jax.lax.broadcasted_iota(jnp.int32, (block_rows, _LANE), 0)
            valid = (rid + row0) < valid_rows

        for p_ref, acc in zip(pred_refs, acc_refs):
            d = p_ref[...].astype(jnp.float32) - tgt
            sq = d * d
            if needs_mask:
                sq = jnp.where(valid, sq, 0.0)
            acc[...] += sq              # pure-VPU accumulate every step

        @pl.when(i == pl.num_programs(1) - 1)
        def _finalize():                # one cross-lane reduce + SMEM store per core
            for k, acc in enumerate(acc_refs):
                out_ref[0, k] = jnp.sum(acc[...])

    return kernel


def _head_sse(pred_heads, tgt_head, rows):
    """Per-prediction SSE over the lane-dense [rows, _LANE] head."""
    n_pred = len(pred_heads)
    arrays = tuple(pred_heads) + (tgt_head,)
    sub = max(_sublane(a.dtype) for a in arrays)
    max_itemsize = max(jnp.dtype(a.dtype).itemsize for a in arrays)
    max_block_rows = max(sub, (_MAX_BLOCK_BYTES // (_LANE * max_itemsize)) // sub * sub)

    nc, steps, block_rows = _plan_blocks(rows, sub, max_block_rows, _NUM_CORES)
    needs_mask = nc * steps * block_rows != rows

    kernel = _make_sse_kernel(n_pred, block_rows, steps, rows, needs_mask)
    block = (block_rows, _LANE)
    in_map = lambda c, i: (c * steps + i, 0)

    streamed = sum(rows * _LANE * jnp.dtype(a.dtype).itemsize for a in arrays)
    cost = pl.CostEstimate(flops=3 * n_pred * rows * _LANE,
                           transcendentals=0,
                           bytes_accessed=int(streamed))

    partial = pl.pallas_call(
        kernel,
        out_shape=jax.ShapeDtypeStruct((nc, n_pred), jnp.float32),
        grid_spec=pltpu.PrefetchScalarGridSpec(
            num_scalar_prefetch=0,
            grid=(nc, steps),
            in_specs=[pl.BlockSpec(block, in_map) for _ in range(n_pred + 1)],
            out_specs=pl.BlockSpec((1, n_pred), lambda c, i: (c, 0),
                                   memory_space=pltpu.SMEM),
            scratch_shapes=[pltpu.VMEM(block, jnp.float32)] * n_pred,
        ),
        compiler_params=pltpu.CompilerParams(
            dimension_semantics=("parallel", "arbitrary"),
            vmem_limit_bytes=_VMEM_LIMIT,
        ),
        cost_estimate=cost,
    )(*arrays)
    return jnp.sum(partial, axis=0)     # (n_pred,) summed over TensorCores


def _mse_impl(preds, target):
    """Mean-squared-error of each prediction against a shared target -> (n_pred,)."""
    for p in preds:
        assert p.shape == target.shape, (
            f"prediction shape {p.shape} != target shape {target.shape}")
    n = target.size
    flats = tuple(p.reshape(-1) for p in preds) + (target.reshape(-1),)
    rows = n // _LANE
    head_n = rows * _LANE
    tail_n = n - head_n

    sse = jnp.zeros((len(preds),), jnp.float32)
    if rows > 0:
        if tail_n:
            # TODO(synk): XLA may materialize this prefix slice; when numel % 512 == 0
            # (typical NeRF ray batches) the reshape below is a free, zero-copy view.
            heads = tuple(f[:head_n].reshape(rows, _LANE) for f in flats)
        else:
            heads = tuple(f.reshape(rows, _LANE) for f in flats)
        sse = sse + _head_sse(heads[:-1], heads[-1], rows)
    if tail_n:                          # < 512 leftover elements: plain-jnp reduce
        tt = flats[-1][head_n:].astype(jnp.float32)
        sse = sse + jnp.stack(
            [jnp.sum((f[head_n:].astype(jnp.float32) - tt) ** 2)
             for f in flats[:-1]])
    return sse * jnp.float32(1.0 / n)


@jax.jit
def _mse_pair(coarse, fine, target):
    m = _mse_impl((coarse, fine), target)
    return m[0], m[1]


@jax.jit
def _mse_single(pred, target):
    return _mse_impl((pred,), target)[0]


def nerf_loss(inputs, targets):
    """Mirror of NerfLoss.forward: returns (total_loss, loss_dict)."""
    loss_dict = {}
    if "rgb_fine" in inputs:
        c_loss, f_loss = _mse_pair(inputs["rgb_coarse"], inputs["rgb_fine"], targets)
        loss_dict["coarse_color"] = c_loss
        loss_dict["fine_color"] = f_loss
    else:
        loss_dict["coarse_color"] = _mse_single(inputs["rgb_coarse"], targets)
    total = sum(l for l in loss_dict.values())
    return total, loss_dict


if __name__ == "__main__":
    key = jax.random.PRNGKey(0)
    ks = jax.random.split(key, 12)

    def ref_mse(a, b):
        return jnp.mean((a.astype(jnp.float32) - b.astype(jnp.float32)) ** 2)

    def check(got, want, tol=1e-4):
        assert jnp.allclose(got, want, rtol=tol, atol=1e-6), (got, want)

    # 1) Small, non-512-aligned element count (5-row head + 440-element jnp tail).
    rc = jax.random.uniform(ks[0], (1000, 3), dtype=jnp.float32)
    rf = jax.random.uniform(ks[1], (1000, 3), dtype=jnp.float32)
    tg = jax.random.uniform(ks[2], (1000, 3), dtype=jnp.float32)
    total, ld = nerf_loss({"rgb_coarse": rc, "rgb_fine": rf}, tg)
    jax.block_until_ready(total)
    check(ld["coarse_color"], ref_mse(rc, tg))
    check(ld["fine_color"], ref_mse(rf, tg))
    check(total, ref_mse(rc, tg) + ref_mse(rf, tg))

    # 2) Coarse-only path.
    total_c, ld_c = nerf_loss({"rgb_coarse": rc}, tg)
    jax.block_until_ready(total_c)
    assert "fine_color" not in ld_c
    check(total_c, ref_mse(rc, tg))

    # 3) 512-aligned batch: zero-copy reshape, 2-core split, masked last block.
    rc3 = jax.random.uniform(ks[3], (4096, 3), dtype=jnp.float32)
    rf3 = jax.random.uniform(ks[4], (4096, 3), dtype=jnp.float32)
    tg3 = jax.random.uniform(ks[5], (4096, 3), dtype=jnp.float32)
    t3, ld3 = nerf_loss({"rgb_coarse": rc3, "rgb_fine": rf3}, tg3)
    jax.block_until_ready(t3)
    check(ld3["coarse_color"], ref_mse(rc3, tg3))
    check(ld3["fine_color"], ref_mse(rf3, tg3))

    # 4) The 90k-ray case from the review: two balanced 264-row blocks, 1 masked row.
    rc4 = jax.random.uniform(ks[6], (90_000, 3), dtype=jnp.float32)
    rf4 = jax.random.uniform(ks[7], (90_000, 3), dtype=jnp.float32)
    tg4 = jax.random.uniform(ks[8], (90_000, 3), dtype=jnp.float32)
    t4, ld4 = nerf_loss({"rgb_coarse": rc4, "rgb_fine": rf4}, tg4)
    jax.block_until_ready(t4)
    check(ld4["coarse_color"], ref_mse(rc4, tg4))
    check(ld4["fine_color"], ref_mse(rf4, tg4))
    check(t4, ref_mse(rc4, tg4) + ref_mse(rf4, tg4))

    # 5) Multi-step-per-core grid (grid=(2,2)) + masked last block, coarse-only.
    rc5 = jax.random.uniform(ks[9], (350_000, 3), dtype=jnp.float32)
    tg5 = jax.random.uniform(ks[10], (350_000, 3), dtype=jnp.float32)
    t5, ld5 = nerf_loss({"rgb_coarse": rc5}, tg5)
    jax.block_until_ready(t5)
    check(ld5["coarse_color"], ref_mse(rc5, tg5))

    # 6) bf16 inputs: native-width streaming, 16-row sublane granularity, f32 accum.
    rc6 = jax.random.uniform(ks[11], (4096, 3), dtype=jnp.float32).astype(jnp.bfloat16)
    rf6 = jax.random.uniform(ks[1], (4096, 3), dtype=jnp.float32).astype(jnp.bfloat16)
    tg6 = jax.random.uniform(ks[0], (4096, 3), dtype=jnp.float32).astype(jnp.bfloat16)
    t6, ld6 = nerf_loss({"rgb_coarse": rc6, "rgb_fine": rf6}, tg6)
    jax.block_until_ready(t6)
    check(ld6["coarse_color"], ref_mse(rc6, tg6), tol=1e-3)
    check(ld6["fine_color"], ref_mse(rf6, tg6), tol=1e-3)

    print("KERNEL_OK")
</pallas_src>

<mosaic_0001>
module attributes {stable_mosaic.version = 11 : i64} {
  func.func @kernel(%arg0: i32, %arg1: i32, %arg2: memref<5x512xf32, #tpu.memory_space<vmem>>, %arg3: memref<5x512xf32, #tpu.memory_space<vmem>>, %arg4: memref<5x512xf32, #tpu.memory_space<vmem>>, %arg5: memref<1x2xf32, #tpu.memory_space<smem>>, %arg6: memref<5x512xf32, #tpu.memory_space<vmem>>, %arg7: memref<5x512xf32, #tpu.memory_space<vmem>>) attributes {dimension_semantics = [#tpu.dimension_semantics<parallel>, #tpu.dimension_semantics<arbitrary>], iteration_bounds = array<i64: 1, 1>, scalar_prefetch = 0 : i64, scratch_operands = 2 : i64, tpu.core_type = #tpu.core_type<tc>, window_params = [{transform_indices = @transform_0, window_bounds = array<i64: 5, 512>}, {transform_indices = @transform_1, window_bounds = array<i64: 5, 512>}, {transform_indices = @transform_2, window_bounds = array<i64: 5, 512>}, {transform_indices = @transform_3, window_bounds = array<i64: 1, 2>}]} {
    %c0_i32 = arith.constant 0 : i32
    %0 = arith.cmpi eq, %arg1, %c0_i32 : i32
    %1 = arith.extui %0 : i1 to i32
    %c0_i32_0 = arith.constant 0 : i32
    %2 = arith.cmpi ne, %1, %c0_i32_0 : i32
    scf.if %2 {
      %cst = arith.constant 0.000000e+00 : f32
      %19 = vector.broadcast %cst : f32 to vector<5x512xf32>
      %c0_16 = arith.constant 0 : index
      %c0_17 = arith.constant 0 : index
      %20 = vector.load %arg6[%c0_16, %c0_17] : memref<5x512xf32, #tpu.memory_space<vmem>>, vector<5x512xf32>
      tpu.vector_store %arg6[%c0_16, %c0_17], %19 {strides = array<i32>} : memref<5x512xf32, #tpu.memory_space<vmem>>, vector<5x512xf32>,
      %cst_18 = arith.constant 0.000000e+00 : f32
      %21 = vector.broadcast %cst_18 : f32 to vector<5x512xf32>
      %c0_19 = arith.constant 0 : index
      %c0_20 = arith.constant 0 : index
      %22 = vector.load %arg7[%c0_19, %c0_20] : memref<5x512xf32, #tpu.memory_space<vmem>>, vector<5x512xf32>
      tpu.vector_store %arg7[%c0_19, %c0_20], %21 {strides = array<i32>} : memref<5x512xf32, #tpu.memory_space<vmem>>, vector<5x512xf32>,
    } else {
    }
    %c0 = arith.constant 0 : index
    %c0_1 = arith.constant 0 : index
    %3 = vector.load %arg4[%c0, %c0_1] : memref<5x512xf32, #tpu.memory_space<vmem>>, vector<5x512xf32>
    %c0_2 = arith.constant 0 : index
    %c0_3 = arith.constant 0 : index
    %4 = vector.load %arg2[%c0_2, %c0_3] : memref<5x512xf32, #tpu.memory_space<vmem>>, vector<5x512xf32>
    %5 = arith.subf %4, %3 : vector<5x512xf32>
    %6 = arith.mulf %5, %5 : vector<5x512xf32>
    %c0_4 = arith.constant 0 : index
    %c0_5 = arith.constant 0 : index
    %7 = vector.load %arg6[%c0_4, %c0_5] : memref<5x512xf32, #tpu.memory_space<vmem>>, vector<5x512xf32>
    %8 = arith.addf %7, %6 : vector<5x512xf32>
    %c0_6 = arith.constant 0 : index
    %c0_7 = arith.constant 0 : index
    %9 = vector.load %arg6[%c0_6, %c0_7] : memref<5x512xf32, #tpu.memory_space<vmem>>, vector<5x512xf32>
    tpu.vector_store %arg6[%c0_6, %c0_7], %8 {strides = array<i32>} : memref<5x512xf32, #tpu.memory_space<vmem>>, vector<5x512xf32>,
    %c0_8 = arith.constant 0 : index
    %c0_9 = arith.constant 0 : index
    %10 = vector.load %arg3[%c0_8, %c0_9] : memref<5x512xf32, #tpu.memory_space<vmem>>, vector<5x512xf32>
    %11 = arith.subf %10, %3 : vector<5x512xf32>
    %12 = arith.mulf %11, %11 : vector<5x512xf32>
    %c0_10 = arith.constant 0 : index
    %c0_11 = arith.constant 0 : index
    %13 = vector.load %arg7[%c0_10, %c0_11] : memref<5x512xf32, #tpu.memory_space<vmem>>, vector<5x512xf32>
    %14 = arith.addf %13, %12 : vector<5x512xf32>
    %c0_12 = arith.constant 0 : index
    %c0_13 = arith.constant 0 : index
    %15 = vector.load %arg7[%c0_12, %c0_13] : memref<5x512xf32, #tpu.memory_space<vmem>>, vector<5x512xf32>
    tpu.vector_store %arg7[%c0_12, %c0_13], %14 {strides = array<i32>} : memref<5x512xf32, #tpu.memory_space<vmem>>, vector<5x512xf32>,
    %c0_i32_14 = arith.constant 0 : i32
    %16 = arith.cmpi eq, %arg1, %c0_i32_14 : i32
    %17 = arith.extui %16 : i1 to i32
    %c0_i32_15 = arith.constant 0 : i32
    %18 = arith.cmpi ne, %17, %c0_i32_15 : i32
    scf.if %18 {
      %c0_16 = arith.constant 0 : index
      %c0_17 = arith.constant 0 : index
      %19 = vector.load %arg6[%c0_16, %c0_17] : memref<5x512xf32, #tpu.memory_space<vmem>>, vector<5x512xf32>
      %20 = vector.shape_cast %19 : vector<5x512xf32> to vector<1x5x512xf32>
      %cst = arith.constant dense<0.000000e+00> : vector<1xf32>
      %21 = vector.multi_reduction <add>, %20, %cst [1, 2] : vector<1x5x512xf32> to vector<1xf32>
      %22 = vector.shape_cast %21 : vector<1xf32> to vector<1x1x1xf32>
      %23 = vector.extract %22[0, 0, 0] : f32 from vector<1x1x1xf32>
      %c0_18 = arith.constant 0 : index
      %c0_19 = arith.constant 0 : index
      %24 = memref.load %arg5[%c0_18, %c0_19] : memref<1x2xf32, #tpu.memory_space<smem>>
      memref.store %23, %arg5[%c0_18, %c0_19] : memref<1x2xf32, #tpu.memory_space<smem>>
      %c0_20 = arith.constant 0 : index
      %c0_21 = arith.constant 0 : index
      %25 = vector.load %arg7[%c0_20, %c0_21] : memref<5x512xf32, #tpu.memory_space<vmem>>, vector<5x512xf32>
      %26 = vector.shape_cast %25 : vector<5x512xf32> to vector<1x5x512xf32>
      %cst_22 = arith.constant dense<0.000000e+00> : vector<1xf32>
      %27 = vector.multi_reduction <add>, %26, %cst_22 [1, 2] : vector<1x5x512xf32> to vector<1xf32>
      %28 = vector.shape_cast %27 : vector<1xf32> to vector<1x1x1xf32>
      %29 = vector.extract %28[0, 0, 0] : f32 from vector<1x1x1xf32>
      %c0_23 = arith.constant 0 : index
      %c1 = arith.constant 1 : index
      %30 = memref.load %arg5[%c0_23, %c1] : memref<1x2xf32, #tpu.memory_space<smem>>
      memref.store %29, %arg5[%c0_23, %c1] : memref<1x2xf32, #tpu.memory_space<smem>>
    } else {
    }
    return
  }
  func.func @transform_0(%arg0: i32, %arg1: i32) -> (i32, i32) {
    %c1_i32 = arith.constant 1 : i32
    %0 = arith.muli %arg0, %c1_i32 : i32
    %1 = arith.addi %0, %arg1 : i32
    %c0_i32 = arith.constant 0 : i32
    %c0_i32_0 = arith.constant 0 : i32
    return %1, %c0_i32 : i32, i32
  }
  func.func @transform_1(%arg0: i32, %arg1: i32) -> (i32, i32) {
    %c1_i32 = arith.constant 1 : i32
    %0 = arith.muli %arg0, %c1_i32 : i32
    %1 = arith.addi %0, %arg1 : i32
    %c0_i32 = arith.constant 0 : i32
    %c0_i32_0 = arith.constant 0 : i32
    return %1, %c0_i32 : i32, i32
  }
  func.func @transform_2(%arg0: i32, %arg1: i32) -> (i32, i32) {
    %c1_i32 = arith.constant 1 : i32
    %0 = arith.muli %arg0, %c1_i32 : i32
    %1 = arith.addi %0, %arg1 : i32
    %c0_i32 = arith.constant 0 : i32
    %c0_i32_0 = arith.constant 0 : i32
    return %1, %c0_i32 : i32, i32
  }
  func.func @transform_3(%arg0: i32, %arg1: i32) -> (i32, i32) {
    %c0_i32 = arith.constant 0 : i32
    %c0_i32_0 = arith.constant 0 : i32
    return %arg0, %c0_i32 : i32, i32
  }
}

</mosaic_0001>

<bundles_post_ra>
// kernel: _mse_pair.1
= control target key start
LH: loop header
LB: loop body
LE: loop exit
PB: predicated region body
PF: predicated region fallthrough
CT: control target
= control target key end

     0   :  { %v240_v2 = vmov 0.0   ;;  %s309_s0 = inlined_call_operand.vmem [shape: f32[5,512], index: 0, kind: input, shape index: {}]   ;;  %s310_s1 = inlined_call_operand.vmem [shape: f32[5,512], index: 1, kind: input, shape index: {}]   ;;  %s311_s2 = inlined_call_operand.vmem [shape: f32[5,512], index: 2, kind: input, shape index: {}]   ;;  %s312_s3 = inlined_call_operand.vmem [shape: f32[1,2], index: 3, kind: output, shape index: {}]  }
   0x1   :  { %v87_v0 = vld [vmem:[%s311_s2] sm:$0x1f]  ;;  %v88_v1 = vld [vmem:[%s311_s2 + $0x8] sm:$0x1f]  ;;  %79 = vst [vmem:[#allocation2 + $0x10] sm:$0x1f] %v240_v2 }
   0x2   :  { %80 = vst [vmem:[#allocation2] sm:$0x1f] %v240_v2  ;;  %81 = vst [vmem:[#allocation2 + $0x18] sm:$0x1f] %v240_v2  ;;  %v89_v3 = vld [vmem:[%s311_s2 + $0x10] sm:$0x1f] }
   0x3   :  { %82 = vst [vmem:[#allocation2 + $0x8] sm:$0x1f] %v240_v2  ;;  %v90_v4 = vld [vmem:[%s311_s2 + $0x18] sm:$0x1f]  ;;  %v91_v5 = vld [vmem:[%s309_s0] sm:$0x1f] }
   0x4   :  { %83 = vst [vmem:[#allocation3] sm:$0x1f] %v240_v2  ;;  %84 = vst [vmem:[#allocation3 + $0x18] sm:$0x1f] %v240_v2  ;;  %v92_v6 = vld [vmem:[%s309_s0 + $0x8] sm:$0x1f]  ;;  %v95_v9 = vsub.f32 %v91_v5, %v87_v0 }
   0x5   :  { %85 = vst [vmem:[#allocation3 + $0x8] sm:$0x1f] %v240_v2  ;;  %86 = vst [vmem:[#allocation3 + $0x10] sm:$0x1f] %v240_v2  ;;  %v93_v7 = vld [vmem:[%s309_s0 + $0x10] sm:$0x1f]  ;;  %v96_v10 = vsub.f32 %v92_v6, %v88_v1 }
   0x6   :  { %v94_v8 = vld [vmem:[%s309_s0 + $0x18] sm:$0x1f]  ;;  %v97_v11 = vsub.f32 %v93_v7, %v89_v3  ;;  %v115_v13 = vld [vmem:[%s310_s1] sm:$0x1f]  ;;  %v116_v14 = vld [vmem:[%s310_s1 + $0x8] sm:$0x1f] }
   0x7   :  { %v98_v12 = vsub.f32 %v94_v8, %v90_v4  ;;  %v117_v15 = vld [vmem:[%s310_s1 + $0x10] sm:$0x1f]  ;;  %v118_v16 = vld [vmem:[%s310_s1 + $0x18] sm:$0x1f]  ;;  %v119_v17 = vsub.f32 %v115_v13, %v87_v0  ;;  %v120_v18 = vsub.f32 %v116_v14, %v88_v1 }
   0x8   :  { %v121_v19 = vsub.f32 %v117_v15, %v89_v3 }
   0x9   :  { %8 = vsyncpa [#allocation5], 0  ;;  %v99_v20 = vmul.f32 %v95_v9, %v95_v9  ;;  %v100_v21 = vmul.f32 %v96_v10, %v96_v10  ;;  %v101_v22 = vmul.f32 %v97_v11, %v97_v11  ;;  %v122_v23 = vsub.f32 %v118_v16, %v90_v4  ;;  %v103_v29 = vld [vmem:[#allocation2 + $0x10] sm:$0x1f]  ;;  %v104_v30 = vld [vmem:[#allocation2] sm:$0x1f] }
   0xa   :  { %v102_v24 = vmul.f32 %v98_v12, %v98_v12  ;;  %v123_v25 = vmul.f32 %v119_v17, %v119_v17  ;;  %v124_v26 = vmul.f32 %v120_v18, %v120_v18  ;;  %v125_v27 = vmul.f32 %v121_v19, %v121_v19  ;;  %v105_v31 = vld [vmem:[#allocation2 + $0x18] sm:$0x1f]  ;;  %v106_v32 = vld [vmem:[#allocation2 + $0x8] sm:$0x1f]  ;;  %s193_s9 = sshll.u32 %s312_s3, 4  ;;  %s194_s9 = int_to_ptr.vmem [resolvable:$true] %s193_s9 }
   0xb   :  { %v126_v28 = vmul.f32 %v122_v23, %v122_v23  ;;  %v107_v33 = vadd.f32 %v103_v29, %v99_v20  ;;  %v108_v34 = vadd.f32 %v104_v30, %v100_v21  ;;  %v109_v35 = vadd.f32 %v105_v31, %v101_v22  ;;  %v127_v36 = vld [vmem:[#allocation3] sm:$0x1f]  ;;  %v128_v37 = vld [vmem:[#allocation3 + $0x18] sm:$0x1f]  ;;  %s226_s11 = scalar_lea.vmem %s194_s9, 16  ;;  %p231_p1 = scmp.lt.s32.totalorder %s194_s9, %s194_s9 }
   0xc   :  { %v110_v38 = vadd.f32 %v106_v32, %v102_v24  ;;  %v129_v39 = vld [vmem:[#allocation3 + $0x8] sm:$0x1f]  ;;  %v130_v40 = vld [vmem:[#allocation3 + $0x10] sm:$0x1f]  ;;  %v131_v41 = vadd.f32 %v127_v36, %v123_v25  ;;  %v132_v42 = vadd.f32 %v128_v37, %v124_v26  ;;  %vm146_vm0 = vcmask 1044480   ;;  %p227_p0 = scmp.ne.s32.totalorder %s194_s9, %s226_s11  ;;  %p232_p2 = scmp.lt.s32.totalorder %s226_s11, %s226_s11 }
   0xd   :  { %111 = vst [vmem:[#allocation2 + $0x10] sm:$0x1f] %v107_v33  ;;  %112 = vst [vmem:[#allocation2] sm:$0x1f] %v108_v34  ;;  %v133_v43 = vadd.f32 %v129_v39, %v125_v27  ;;  %v134_v44 = vadd.f32 %v130_v40, %v126_v28 }
   0xe   :  { %113 = vst [vmem:[#allocation2 + $0x18] sm:$0x1f] %v109_v35  ;;  %114 = vst [vmem:[#allocation2 + $0x8] sm:$0x1f] %v110_v38  ;;  %p233_p3 = por %p232_p2, %p231_p1 }
   0xf   :  { %135 = vst [vmem:[#allocation3] sm:$0x1f] %v131_v41  ;;  %136 = vst [vmem:[#allocation3 + $0x18] sm:$0x1f] %v132_v42 }
  0x10   :  { %137 = vst [vmem:[#allocation3 + $0x8] sm:$0x1f] %v133_v43  ;;  %138 = vst [vmem:[#allocation3 + $0x10] sm:$0x1f] %v134_v44  ;;  %p234_p4 = pnand %p233_p3, %p227_p0 }
  0x14   :  { %v142_v45 = vld [vmem:[#allocation2 + $0x10] sm:$0x1f]  ;;  %v143_v46 = vld [vmem:[#allocation2] sm:$0x1f] }
  0x15   :  { %v144_v47 = vld [vmem:[#allocation2 + $0x18] sm:$0x1f]  ;;  %v145_v48 = vld [vmem:[#allocation2 + $0x8] sm:$0x1f]  ;;  %v147_v49 = vsel %vm146_vm0, %v142_v45, 0.0  ;;  %v148_v50 = vsel %vm146_vm0, %v143_v46, 0.0 }
  0x16   :  { %v150_v51 = vsel %vm146_vm0, %v144_v47, 0.0  ;;  %v149_v52 = vadd.f32 %v148_v50, %v147_v49  ;;  %v152_v53 = vsel %vm146_vm0, %v145_v48, 0.0  ;;  %v165_v54 = vld [vmem:[#allocation3] sm:$0x1f]  ;;  %v166_v55 = vld [vmem:[#allocation3 + $0x18] sm:$0x1f] }
  0x17   :  { %v167_v56 = vld [vmem:[#allocation3 + $0x8] sm:$0x1f]  ;;  %v168_v57 = vld [vmem:[#allocation3 + $0x10] sm:$0x1f]  ;;  %v169_v58 = vsel %vm146_vm0, %v165_v54, 0.0  ;;  %v170_v59 = vsel %vm146_vm0, %v166_v55, 0.0 }
  0x18   :  { %v151_v60 = vadd.f32 %v150_v51, %v149_v52  ;;  %v171_v61 = vadd.f32 %v170_v59, %v169_v58  ;;  %v172_v62 = vsel %vm146_vm0, %v167_v56, 0.0  ;;  %v174_v63 = vsel %vm146_vm0, %v168_v57, 0.0 }
  0x1a   :  { %v153_v0 = vadd.f32 %v152_v53, %v151_v60  ;;  %v173_v1 = vadd.f32 %v172_v62, %v171_v61 }
  0x1c   :  { %154 = vadd.xlane.f32.xlu0 %v153_v0  ;;  %v175_v2 = vadd.f32 %v174_v63, %v173_v1 }
  0x20   :  { %176 = vadd.xlane.f32.xlu0 %v175_v2 }
  0xa5   :  { %v155_v3 = vpop.xlane.xlu0 %154 }
  0xa6   :  { %v156_v4 = vrot.slane %v155_v3, 4 }
  0xa8   :  { %v157_v5 = vadd.f32 %v156_v4, %v155_v3 }
  0xa9   :  { %v177_v6 = vpop.xlane.xlu0 %176 }
  0xaa   :  { %v158_v7 = vrot.slane %v157_v5, 2  ;;  %v178_v8 = vrot.slane %v177_v6, 4 }
  0xac   :  { %v179_v9 = vadd.f32 %v178_v8, %v177_v6  ;;  %v159_v10 = vadd.f32 %v158_v7, %v157_v5 }
  0xae   :  { %v180_v11 = vrot.slane %v179_v9, 2  ;;  %v160_v12 = vrot.slane %v159_v10, 1 }
  0xb0   :  { %v181_v13 = vadd.f32 %v180_v11, %v179_v9  ;;  %v161_v14 = vadd.f32 %v160_v12, %v159_v10 }
  0xb2   :  { %220 = vpush %v161_v14  ;;  %v182_v15 = vrot.slane %v181_v13, 1 }
  0xb4   :  { %v183_v16 = vadd.f32 %v182_v15, %v181_v13 }
  0xb6   :  { %222 = vpush %v183_v16 }
  0xe3   :  { %s221_s0 = spop %220 }
  0xe4   :  { %164 = sst [smem:[#allocation4]] %s221_s0 }
  0xe7   :  { %s223_s10 = spop %222 }
  0xe8   :  { %186 = sst [smem:[#allocation4 + $0x1]] %s223_s10 }
  0xe9   :  { %237 = shalt.err (!%p234_p4)
}
  0xea   :  { %s241_s12 = smov [#allocation4]  }
  0xeb   :  { %196 = dma.smem_to_vmem %s241_s12, 16, %s194_s9, [#allocation5]  }
  0xec   :  { %238 = dma.done.wait [#allocation5], 16  }
  0xed   :  { %239 = vsyncadd [#allocation5], 4294967280 }
  0xee   :  { %200 = sfence }
  0xef   :  { %201 = vsyncpa [#allocation5], 1 }

</bundles_post_ra>
